<compile_context>
chip_gen: v5e
topology: v5e:2x2
jax: 0.10.0
libtpu: 0.0.40
codegen_flags: <defaults>
</compile_context>

<pallas_src>
import math

import jax
import jax.numpy as jnp
from jax.experimental import pallas as pl
from jax.experimental.pallas import tpu as pltpu


_LANE = 512  # lane-dense last dim (multiple of 128)


def _drop_path_kernel(scale_ref, x_ref, o_ref):
    # scale_ref: SMEM f32 (N,) -- 0.0 for dropped samples, 1/keep_prob for kept.
    # x_ref / o_ref: VMEM tiles of shape (1, r_tile, _LANE).
    b = pl.program_id(0)
    s = scale_ref[b].astype(o_ref.dtype)
    o_ref[...] = x_ref[...] * s


def drop_path(x, key, drop_prob=0.0, training=True):
    """Pallas equivalent of DropPath.forward.

    x: (N, ...). Returns x unchanged when drop_prob == 0 or not training;
    otherwise multiplies each sample by Bernoulli(keep_prob) mask / keep_prob.
    """
    if drop_prob == 0.0 or not training:
        return x

    keep_prob = 1.0 - drop_prob
    n = x.shape[0]
    f = math.prod(x.shape[1:])

    # ---- lane-dense re-tiling: (N, F) -> (N, rows, _LANE), padded if needed.
    rows = pl.cdiv(f, _LANE)

    # ~1 MiB per buffer, rounded down to a multiple of 8 sublanes.
    itemsize = jnp.dtype(x.dtype).itemsize
    target_rows = max(8, ((1 << 20) // (_LANE * itemsize)) // 8 * 8)
    if rows <= target_rows:
        r_tile = rows                      # full extent (allowed even if <8)
        rows_pad = rows
    else:
        r_tile = target_rows
        rows_pad = pl.cdiv(rows, r_tile) * r_tile

    f_pad = rows_pad * _LANE
    x_flat = x.reshape(n, f)
    if f_pad != f:
        x_flat = jnp.pad(x_flat, ((0, 0), (0, f_pad - f)))
    x3 = x_flat.reshape(n, rows_pad, _LANE)

    # ---- per-sample scale (0 or 1/keep_prob), precomputed as f32.
    keep = jax.random.uniform(key, (n,), dtype=jnp.float32) < keep_prob
    scale = keep.astype(jnp.float32) * jnp.float32(1.0 / keep_prob)

    grid = (n, rows_pad // r_tile)

    out = pl.pallas_call(
        _drop_path_kernel,
        out_shape=jax.ShapeDtypeStruct((n, rows_pad, _LANE), x.dtype),
        grid_spec=pltpu.PrefetchScalarGridSpec(
            num_scalar_prefetch=1,  # scale -> SMEM
            grid=grid,
            in_specs=[
                pl.BlockSpec((1, r_tile, _LANE), lambda b, t, scale: (b, t, 0)),
            ],
            out_specs=pl.BlockSpec(
                (1, r_tile, _LANE), lambda b, t, scale: (b, t, 0)
            ),
        ),
        compiler_params=pltpu.CompilerParams(
            dimension_semantics=("parallel", "parallel"),
        ),
    )(scale, x3)

    out = out.reshape(n, f_pad)
    if f_pad != f:
        out = out[:, :f]
    return out.reshape(x.shape)


if __name__ == "__main__":
    key = jax.random.PRNGKey(0)
    kx, kmask = jax.random.split(key)

    # Small NCHW input consistent with the module's (B, 1, 1, 1) mask broadcast.
    x = jax.random.normal(kx, (2, 4, 16, 16), dtype=jnp.float32)

    # Eval mode (or drop_prob == 0): identity.
    y_eval = drop_path(x, kmask, drop_prob=0.2, training=False)

    # Training mode with drop_prob > 0: per-sample drop + rescale.
    drop_prob = 0.5
    y_train = drop_path(x, kmask, drop_prob=drop_prob, training=True)
    y_train = jax.block_until_ready(y_train)

    # Pure-JAX reference check.
    keep_prob = 1.0 - drop_prob
    ref_mask = (
        jax.random.uniform(kmask, (x.shape[0],), dtype=jnp.float32) < keep_prob
    ).astype(jnp.float32)[:, None, None, None]
    ref = x * ref_mask / keep_prob

    assert jnp.allclose(y_eval, x), "eval path must be identity"
    assert jnp.allclose(y_train, ref, atol=1e-6), "train path mismatch"

    print("KERNEL_OK")
</pallas_src>

<mosaic_0001>
module attributes {stable_mosaic.version = 11 : i64} {
  func.func @_drop_path_kernel(%arg0: i32, %arg1: i32, %arg2: memref<2xf32, #tpu.memory_space<smem>>, %arg3: memref<1x2x512xf32, #tpu.memory_space<vmem>>, %arg4: memref<1x2x512xf32, #tpu.memory_space<vmem>>) attributes {dimension_semantics = [#tpu.dimension_semantics<parallel>, #tpu.dimension_semantics<parallel>], iteration_bounds = array<i64: 2, 1>, scalar_prefetch = 1 : i64, scratch_operands = 0 : i64, tpu.core_type = #tpu.core_type<tc>, window_params = [{transform_indices = @transform_0, window_bounds = array<i64: 1, 2, 512>}, {transform_indices = @transform_1, window_bounds = array<i64: 1, 2, 512>}]} {
    %0 = arith.index_cast %arg0 : i32 to index
    %1 = memref.load %arg2[%0] : memref<2xf32, #tpu.memory_space<smem>>
    %c0 = arith.constant 0 : index
    %c0_0 = arith.constant 0 : index
    %c0_1 = arith.constant 0 : index
    %2 = vector.load %arg3[%c0, %c0_0, %c0_1] : memref<1x2x512xf32, #tpu.memory_space<vmem>>, vector<1x2x512xf32>
    %3 = vector.broadcast %1 : f32 to vector<1x2x512xf32>
    %4 = arith.mulf %2, %3 : vector<1x2x512xf32>
    %c0_2 = arith.constant 0 : index
    %c0_3 = arith.constant 0 : index
    %c0_4 = arith.constant 0 : index
    %5 = vector.load %arg4[%c0_2, %c0_3, %c0_4] : memref<1x2x512xf32, #tpu.memory_space<vmem>>, vector<1x2x512xf32>
    tpu.vector_store %arg4[%c0_2, %c0_3, %c0_4], %4 {strides = array<i32>} : memref<1x2x512xf32, #tpu.memory_space<vmem>>, vector<1x2x512xf32>,
    return
  }
  func.func @transform_0(%arg0: i32, %arg1: i32, %arg2: memref<2xf32, #tpu.memory_space<smem>>) -> (i32, i32, i32) {
    %c0_i32 = arith.constant 0 : i32
    %c0_i32_0 = arith.constant 0 : i32
    return %arg0, %arg1, %c0_i32 : i32, i32, i32
  }
  func.func @transform_1(%arg0: i32, %arg1: i32, %arg2: memref<2xf32, #tpu.memory_space<smem>>) -> (i32, i32, i32) {
    %c0_i32 = arith.constant 0 : i32
    %c0_i32_0 = arith.constant 0 : i32
    return %arg0, %arg1, %c0_i32 : i32, i32, i32
  }
}

</mosaic_0001>

<bundles_post_ra>
// kernel: tpu_custom_call.1
= control target key start
LH: loop header
LB: loop body
LE: loop exit
PB: predicated region body
PF: predicated region fallthrough
CT: control target
= control target key end

     0   :  { %s478_s12 = smov [#allocation3]   ;;  %s618_s0 = inlined_call_operand.hbm [shape: f32[2], index: 0, kind: input, shape index: {}]   ;;  %s619_s1 = inlined_call_operand.hbm [shape: f32[2,2,512], index: 1, kind: input, shape index: {}]   ;;  %s620_s2 = inlined_call_operand.hbm [shape: f32[2,2,512], index: 2, kind: output, shape index: {}]  }
   0x1   :  { %s8_s11 = sshll.u32 %s618_s0, 4  ;;  %s9_s11 = int_to_ptr.hbm [resolvable:$true] %s8_s11 }
   0x2   :  { %11 = dma.hbm_to_smem %s9_s11, 16, %s478_s12, [#allocation2] }
   0x3   :  { %444 = dma.done.wait [#allocation2], 16 }
   0x4   :  { %445 = vsyncadd [#allocation2], 4294967280 }
   0x5   :  { %14 = sfence }
   0x6   :  { %15 = vsyncpa [#allocation5], 0 }
   0x7   :  { %17 = vsyncpa [#allocation5 + $0x1], 0 }
   0x8   :  { %18 = vsyncpa [#allocation6], 0 }
   0x9   :  { %20 = vsyncpa [#allocation6 + $0x1], 0  ;;  %s497_s13 = smov 0   ;;  %s499_s14 = smov 0  }
   0xa   :  { %s501_s15 = smov 0   ;;  %s503_s16 = smov 0  }
   0xb   :  { %s505_s17 = smov 0   ;;  %s507_s0 = smov 0  }
   0xc LB: > { %s270_s18 = sadd.s32 4294967295, %s476_s0   ;;  %s271_s19 = sadd.s32 4294967294, %s476_s0   ;;  %s476_s0 = sphi %s507_s0, %s26_s0   ;;  %s472_s17 = sphi %s505_s17, %s629_s17   ;;  %s468_s16 = sphi %s503_s16, %s628_s16   ;;  %s464_s15 = sphi %s501_s15, %s627_s15   ;;  %s460_s14 = sphi %s499_s14, %s626_s14   ;;  %s456_s13 = sphi %s497_s13, %s625_s13  }
   0xd   : > { %s38_s20 = sadd.s32 1, %s472_s17  ;;  %s47_s21 = sadd.s32 1, %s464_s15 }
   0xe   : > { %p40_p0 = scmp.ge.s32.totalorder %s38_s20, 2  ;;  %p54_p1 = scmp.ne.s32.totalorder %s464_s15, %s460_s14 }
   0xf   : > { %p55_p2 = scmp.eq.s32.totalorder %s476_s0, 0  ;;  %p60_p3 = scmp.ne.s32.totalorder %s460_s14, %s456_s13 }
  0x10   : > { %s631_s20 = smov (%p40_p0, %s38_s20), 0  ;;  %p61_p5 = scmp.eq.s32.totalorder %s270_s18, 0 }
  0x11   : > { %p538_p4 = por %p55_p2, %p54_p1  ;;  %s42_s23 = ssub.s32 %s472_s17, %s631_s20 }
  0x12   : > { %p86_p6 = scmp.eq.s32.totalorder %s270_s18, 1  ;;  %p45_p7 = scmp.eq.s32.totalorder %s42_s23, 0 }
  0x13   : > { %p544_p8 = por %p61_p5, %p60_p3  ;;  %p92_p10 = scmp.eq.s32.totalorder %s271_s19, 1 }
  0x14   : > { %p548_p9 = por %p86_p6, %p54_p1  ;;  %p273_p12 = scmp.ge.s32.totalorder %s476_s0, 2 }
  0x15   : > { %s553_s26 = scalar_select %p45_p7, %s464_s15, %s47_s21  }
  0x16   : > { %p555_p11 = por %p92_p10, %p60_p3  ;;  %p299_p13 = scmp.lt.s32.totalorder %s476_s0, 2 }
  0x17   : > { %s112_s28 = sand.u32 1, %s464_s15   ;;  %s285_s30 = sshll.u32 %s472_s17, 3 }
  0x18   : > { %s274_s29 = sshll.u32 %s112_s28, 3  ;;  %s123_s5 = scalar_lea.hbm %s619_s1, %s285_s30 }
  0x19   : > { %s116_s6 = scalar_lea.vmem [#allocation4], %s274_s29  ;;  %s125_s8 = sshll.u32 %s123_s5, 4  ;;  %s126_s8 = int_to_ptr.hbm [resolvable:$true] %s125_s8 }
  0x1a   : > { %s127_s7 = sshll.u32 %s116_s6, 4  ;;  %p292_p0 = pnand %p299_p13, %p538_p4  ;;  %s128_s7 = int_to_ptr.vmem [resolvable:$true] %s127_s7 }
  0x1b   : > { %p277_p1 = scmp.ge.s32.totalorder %s476_s0, 1  ;;  %p132_p2 = scmp.lt.s32.totalorder %s476_s0, 3 }
  0x1c   : > { %s113_s9 = scalar_lea.sflag [#allocation5], %s112_s28 }
  0x1d   : > { %294 = dma.hbm_to_vmem [thread:$0]  (!%p292_p0), %s126_s8, 128, %s128_s7, %s113_s9  }
  0x1e   : > { %p133_p3 = pnand %p277_p1, %p132_p2 }
  0x1f   : > { %s571_s10 = sand.u32 (!%p133_p3), 1, %s460_s14  }
  0x20   : > { %136 = sbr.rel (%p133_p3) target bundleno = 53 (0x35), region = 24  ;;  %s278_s11 = sshll.u32 (!%p133_p3), %s571_s10, 3 }
  0x21   : > { %s139_s12 = scalar_lea.sflag (!%p133_p3), [#allocation5], %s571_s10  ;;  %s142_s18 = scalar_lea.vmem (!%p133_p3), [#allocation4], %s278_s11 }
  0x25   : > { %447 = dma.done.wait (%p544_p8), %s139_s12, 128  }
  0x26   : > { %449 = vsyncadd (%p544_p8), %s139_s12, 4294967168  ;;  %s162_s19 = sld [smem:[#allocation3 + %s468_s16]]  ;;  %s286_s21 = sshll.u32 %s468_s16, 3  ;;  %v163_v0 = vld [vmem:[%s142_s18] sm:$0xff] }
  0x27   : > { %s181_s28 = scalar_lea.hbm %s620_s2, %s286_s21  ;;  %s161_s29 = scalar_lea.vmem [#allocation7], %s278_s11 }
  0x28   : > { %s183_s30 = sshll.u32 %s161_s29, 4  ;;  %s185_s3 = sshll.u32 %s181_s28, 4  ;;  %s184_s30 = int_to_ptr.vmem [resolvable:$true] %s183_s30  ;;  %s186_s3 = int_to_ptr.hbm [resolvable:$true] %s185_s3 }
  0x29   : > { %s168_s24 = scalar_lea.sflag [#allocation6], %s571_s10  ;;  %s406_s4 = sshra.s32 %s186_s3, 4  ;;  %s407_s4 = int_to_ptr.hbm [resolvable:$true] %s406_s4 }
  0x2a   : > { %s408_s5 = scalar_lea.hbm %s407_s4, 8  ;;  %s412_s7 = scalar_lea.hbm %s620_s2, 16 }
  0x2b   : > { %p409_p4 = scmp.ne.s32.totalorder %s407_s4, %s408_s5  ;;  %p413_p7 = scmp.lt.s32.totalorder %s407_s4, %s620_s2 }
  0x2c   : > { %v164_v1 = vstv %s162_s19  ;;  %p414_p8 = scmp.lt.s32.totalorder %s412_s7, %s408_s5 }
  0x2d   : > { %v165_v2 = vmul.f32 %v164_v1, %v163_v0  ;;  %p410_p5 = pnand %p409_p4, %p548_p9 }
  0x2e   : > { %p415_p10 = por %p414_p8, %p413_p7 }
  0x2f   : > { %166 = vst [vmem:[%s161_s29] sm:$0xff] %v165_v2  ;;  %p411_p6 = pneg %p410_p5 }
  0x31   : > { %p416_p13 = pnand %p415_p10, %p411_p6 }
  0x33   : > { %419 = shalt.err (!%p416_p13)
}
  0x34   : > { %289 = dma.vmem_to_hbm [thread:$0]  (%p548_p9), %s184_s30, 128, %s186_s3, %s168_s24  }
  0x35 PF: > { %s197_s10 = sand.u32 1, %s456_s13   ;;  %p296_p0 = pnand %p273_p12, %p555_p11 }
  0x36   : > { %s198_s11 = scalar_lea.sflag [#allocation6], %s197_s10 }
  0x37   : > { %p297_p1 = pneg %p296_p0 }
  0x39   : > { %451 = dma.done.wait (%p297_p1), %s198_s11, 128  }
  0x3a   : > { %453 = vsyncadd (%p297_p1), %s198_s11, 4294967168  ;;  %s26_s0 = sadd.s32 1, %s476_s0   ;;  %s625_s13 = smov %s460_s14 }
  0x3b   : > { %p23_p2 = scmp.ge.s32.totalorder %s26_s0, 4   ;;  %s626_s14 = smov %s464_s15 }
  0x3c   : > { %s627_s15 = smov %s553_s26  ;;  %s628_s16 = smov %s472_s17 }
  0x3d   : > { %s629_s17 = smov %s631_s20  ;;  %25 = sbr.rel (!%p23_p2) target bundleno = 12 (0xc), region = 69 }
  0x42   :  { %204 = vsyncpa [#allocation5], 1 }
  0x43   :  { %206 = vsyncpa [#allocation5 + $0x1], 1 }
  0x44   :  { %207 = vsyncpa [#allocation6], 1 }
  0x45   :  { %209 = vsyncpa [#allocation6 + $0x1], 1 }

</bundles_post_ra>
